<compile_context>
chip_gen: v6e
topology: v6e:2x2x1
jax: 0.10.0
libtpu: 0.0.40
codegen_flags: <defaults>
</compile_context>

<pallas_src>
import jax
import jax.numpy as jnp
from jax.experimental import pallas as pl
from jax.experimental.pallas import tpu as pltpu


def fm_loss_kernel(x1k_ref, x0k_ref, t_ref, w_ref, b_ref, x1n_ref, x0n_ref,
                   partial_ref, acc_ref):
    # grid = (n, k): n = output-column tile (parallel), k = contraction tile (arbitrary, last)
    k = pl.program_id(1)
    last_k = pl.num_programs(1) - 1

    t = t_ref[...]                                        # (Bp, 1) f32 per-sample time

    @pl.when(k == 0)
    def _init():
        acc_ref[...] = jnp.zeros_like(acc_ref)

    # Flow-matching path for this K-slice of features: x_t = t*x1 + (1-t)*x0.
    xt = t * x1k_ref[...] + (1.0 - t) * x0k_ref[...]      # (Bp, tk) f32

    # Synthetic "network": linear head over flattened features (+ bias + t below).
    # bf16 operands into the MXU, f32 accumulation.
    acc_ref[...] += jnp.dot(xt.astype(jnp.bfloat16), w_ref[...],
                            preferred_element_type=jnp.float32)

    @pl.when(k == last_k)
    def _finalize():
        pred = acc_ref[...] + b_ref[...] + t              # (Bp, tn) f32
        v = x1n_ref[...] - x0n_ref[...]                   # target velocity, this N slice
        err = pred - v
        # per-(sample, n-tile) sum of squared errors; final mean done in the wrapper.
        partial_ref[0, :, :] = jnp.sum(err * err, axis=-1, keepdims=True)


def _pick_tile(d, cap=512):
    for t in (cap, 256, 128):
        if d % t == 0:
            return t
    return d


def fm_loss(x_nchw, noise_nchw, t, w, bias, *, tn=None, tk=None):
    B, C, H, W = x_nchw.shape
    D = C * H * W
    tn = tn or _pick_tile(D)
    tk = tk or _pick_tile(D)
    assert D % tn == 0 and D % tk == 0

    # Pad batch rows to a sublane multiple (8); padded rows are discarded at the end.
    Bp = max(8, ((B + 7) // 8) * 8)
    pad = Bp - B

    x1 = x_nchw.reshape(B, D).astype(jnp.float32)
    x0 = noise_nchw.reshape(B, D).astype(jnp.float32)
    t2 = t.reshape(B, 1).astype(jnp.float32)
    if pad:
        x1 = jnp.pad(x1, ((0, pad), (0, 0)))
        x0 = jnp.pad(x0, ((0, pad), (0, 0)))
        t2 = jnp.pad(t2, ((0, pad), (0, 0)))

    w_bf16 = w.astype(jnp.bfloat16)                       # halve HBM traffic for W
    b2 = bias.reshape(1, D).astype(jnp.float32)

    n_tiles = D // tn
    k_tiles = D // tk

    partial = pl.pallas_call(
        fm_loss_kernel,
        out_shape=jax.ShapeDtypeStruct((n_tiles, Bp, 1), jnp.float32),
        grid=(n_tiles, k_tiles),
        in_specs=[
            pl.BlockSpec((Bp, tk), lambda n, k: (0, k)),   # x1, K-stream for x_t
            pl.BlockSpec((Bp, tk), lambda n, k: (0, k)),   # x0, K-stream for x_t
            pl.BlockSpec((Bp, 1), lambda n, k: (0, 0)),    # t
            pl.BlockSpec((tk, tn), lambda n, k: (k, n)),   # W tile (bf16, pipelined)
            pl.BlockSpec((1, tn), lambda n, k: (0, n)),    # bias slice (resident over k)
            pl.BlockSpec((Bp, tn), lambda n, k: (0, n)),   # x1, N-slice for target v
            pl.BlockSpec((Bp, tn), lambda n, k: (0, n)),   # x0, N-slice for target v
        ],
        out_specs=pl.BlockSpec((1, Bp, 1), lambda n, k: (n, 0, 0)),
        scratch_shapes=[pltpu.VMEM((Bp, tn), jnp.float32)],  # matmul accumulator
        compiler_params=pltpu.CompilerParams(
            dimension_semantics=("parallel", "arbitrary"),
            vmem_limit_bytes=48 << 20,
        ),
    )(x1, x0, t2, w_bf16, b2, x1, x0)

    per = partial[:, :B, 0].sum(axis=0) / D                # (B,) per-sample MSE
    loss = per.mean()                                      # scalar batch-mean loss
    return loss, per


def _reference(x_nchw, noise_nchw, t, w, bias):
    # Pure-JAX reference with the same bf16-operand / f32-accumulation matmul.
    B = x_nchw.shape[0]
    D = w.shape[0]
    x1 = x_nchw.reshape(B, D).astype(jnp.float32)
    x0 = noise_nchw.reshape(B, D).astype(jnp.float32)
    t2 = t.reshape(B, 1).astype(jnp.float32)
    xt = t2 * x1 + (1.0 - t2) * x0
    v = x1 - x0
    pred = jnp.dot(xt.astype(jnp.bfloat16), w.astype(jnp.bfloat16),
                   preferred_element_type=jnp.float32) + bias.reshape(1, D) + t2
    per = jnp.mean((pred - v) ** 2, axis=-1)
    return jnp.mean(per), per


if __name__ == "__main__":
    B, C, H, W = 2, 4, 16, 16
    D = C * H * W

    key = jax.random.PRNGKey(0)
    k_x, k_n, k_t, k_w = jax.random.split(key, 4)

    x = jax.random.normal(k_x, (B, C, H, W), dtype=jnp.float32)      # data x1 (NCHW)
    noise = jax.random.normal(k_n, (B, C, H, W), dtype=jnp.float32)  # noise x0
    t = jax.random.uniform(k_t, (B,), dtype=jnp.float32)             # per-sample time

    # TODO(synk): real diffusion network + GeneralConditioner are external nn.Modules
    # (instantiated from config); replaced by this deterministic linear head over D.
    w_net = jax.random.normal(k_w, (D, D), dtype=jnp.float32) * 0.02
    b_net = jnp.zeros((D,), dtype=jnp.float32)

    loss, per_sample = fm_loss(x, noise, t, w_net, b_net)
    jax.block_until_ready((loss, per_sample))

    ref_loss, ref_per = _reference(x, noise, t, w_net, b_net)
    assert jnp.allclose(loss, ref_loss, rtol=1e-3, atol=1e-3), (loss, ref_loss)
    assert jnp.allclose(per_sample, ref_per, rtol=1e-3, atol=1e-3), (per_sample, ref_per)

    print("KERNEL_OK")
</pallas_src>

<mosaic_0001>
module attributes {stable_mosaic.version = 11 : i64} {
  func.func @fm_loss_kernel(%arg0: i32, %arg1: i32, %arg2: memref<8x512xf32, #tpu.memory_space<vmem>>, %arg3: memref<8x512xf32, #tpu.memory_space<vmem>>, %arg4: memref<8x1xf32, #tpu.memory_space<vmem>>, %arg5: memref<512x512xbf16, #tpu.memory_space<vmem>>, %arg6: memref<1x512xf32, #tpu.memory_space<vmem>>, %arg7: memref<8x512xf32, #tpu.memory_space<vmem>>, %arg8: memref<8x512xf32, #tpu.memory_space<vmem>>, %arg9: memref<1x8x1xf32, #tpu.memory_space<vmem>>, %arg10: memref<8x512xf32, #tpu.memory_space<vmem>>) attributes {dimension_semantics = [#tpu.dimension_semantics<parallel>, #tpu.dimension_semantics<arbitrary>], iteration_bounds = array<i64: 2, 2>, scalar_prefetch = 0 : i64, scratch_operands = 1 : i64, tpu.core_type = #tpu.core_type<tc>, window_params = [{transform_indices = @transform_0, window_bounds = array<i64: 8, 512>}, {transform_indices = @transform_1, window_bounds = array<i64: 8, 512>}, {pipeline_mode = #tpu.pipeline_mode<synchronous>, transform_indices = @transform_2, window_bounds = array<i64: 8, 1>}, {transform_indices = @transform_3, window_bounds = array<i64: 512, 512>}, {transform_indices = @transform_4, window_bounds = array<i64: 1, 512>}, {transform_indices = @transform_5, window_bounds = array<i64: 8, 512>}, {transform_indices = @transform_6, window_bounds = array<i64: 8, 512>}, {transform_indices = @transform_7, window_bounds = array<i64: 1, 8, 1>}]} {
    %c0 = arith.constant 0 : index
    %c0_0 = arith.constant 0 : index
    %0 = vector.load %arg4[%c0, %c0_0] : memref<8x1xf32, #tpu.memory_space<vmem>>, vector<8x1xf32>
    %c0_i32 = arith.constant 0 : i32
    %1 = arith.cmpi eq, %arg1, %c0_i32 : i32
    %2 = arith.extui %1 : i1 to i32
    %c0_i32_1 = arith.constant 0 : i32
    %3 = arith.cmpi ne, %2, %c0_i32_1 : i32
    scf.if %3 {
      %cst_14 = arith.constant 0.000000e+00 : f32
      %22 = vector.broadcast %cst_14 : f32 to vector<8x512xf32>
      %c0_15 = arith.constant 0 : index
      %c0_16 = arith.constant 0 : index
      %23 = vector.load %arg10[%c0_15, %c0_16] : memref<8x512xf32, #tpu.memory_space<vmem>>, vector<8x512xf32>
      tpu.vector_store %arg10[%c0_15, %c0_16], %22 {strides = array<i32>} : memref<8x512xf32, #tpu.memory_space<vmem>>, vector<8x512xf32>,
    } else {
    }
    %c0_2 = arith.constant 0 : index
    %c0_3 = arith.constant 0 : index
    %4 = vector.load %arg2[%c0_2, %c0_3] : memref<8x512xf32, #tpu.memory_space<vmem>>, vector<8x512xf32>
    %5 = vector.broadcast %0 : vector<8x1xf32> to vector<8x512xf32>
    %6 = arith.mulf %5, %4 : vector<8x512xf32>
    %cst = arith.constant 1.000000e+00 : f32
    %7 = vector.broadcast %cst : f32 to vector<8x1xf32>
    %8 = arith.subf %7, %0 : vector<8x1xf32>
    %c0_4 = arith.constant 0 : index
    %c0_5 = arith.constant 0 : index
    %9 = vector.load %arg3[%c0_4, %c0_5] : memref<8x512xf32, #tpu.memory_space<vmem>>, vector<8x512xf32>
    %10 = vector.broadcast %8 : vector<8x1xf32> to vector<8x512xf32>
    %11 = arith.mulf %10, %9 : vector<8x512xf32>
    %12 = arith.addf %6, %11 : vector<8x512xf32>
    %c0_6 = arith.constant 0 : index
    %c0_7 = arith.constant 0 : index
    %13 = vector.load %arg10[%c0_6, %c0_7] : memref<8x512xf32, #tpu.memory_space<vmem>>, vector<8x512xf32>
    %14 = arith.truncf %12 : vector<8x512xf32> to vector<8x512xbf16>
    %c0_8 = arith.constant 0 : index
    %c0_9 = arith.constant 0 : index
    %15 = vector.load %arg5[%c0_8, %c0_9] : memref<512x512xbf16, #tpu.memory_space<vmem>>, vector<512x512xbf16>
    %cst_10 = arith.constant dense<0.000000e+00> : vector<8x512xf32>
    %16 = tpu.matmul %14, %15, %cst_10 {dimension_numbers = #tpu.dot_dimension_numbers<[1], [0], [0], [1], [0, 0, 1, 1], [], []>} : vector<8x512xbf16>, vector<512x512xbf16>, vector<8x512xf32> -> vector<8x512xf32>
    %17 = arith.addf %13, %16 : vector<8x512xf32>
    %c0_11 = arith.constant 0 : index
    %c0_12 = arith.constant 0 : index
    %18 = vector.load %arg10[%c0_11, %c0_12] : memref<8x512xf32, #tpu.memory_space<vmem>>, vector<8x512xf32>
    tpu.vector_store %arg10[%c0_11, %c0_12], %17 {strides = array<i32>} : memref<8x512xf32, #tpu.memory_space<vmem>>, vector<8x512xf32>,
    %c1_i32 = arith.constant 1 : i32
    %19 = arith.cmpi eq, %arg1, %c1_i32 : i32
    %20 = arith.extui %19 : i1 to i32
    %c0_i32_13 = arith.constant 0 : i32
    %21 = arith.cmpi ne, %20, %c0_i32_13 : i32
    scf.if %21 {
      %c0_14 = arith.constant 0 : index
      %c0_15 = arith.constant 0 : index
      %22 = vector.load %arg10[%c0_14, %c0_15] : memref<8x512xf32, #tpu.memory_space<vmem>>, vector<8x512xf32>
      %c0_16 = arith.constant 0 : index
      %c0_17 = arith.constant 0 : index
      %23 = vector.load %arg6[%c0_16, %c0_17] : memref<1x512xf32, #tpu.memory_space<vmem>>, vector<1x512xf32>
      %24 = vector.broadcast %23 : vector<1x512xf32> to vector<8x512xf32>
      %25 = arith.addf %22, %24 : vector<8x512xf32>
      %26 = vector.broadcast %0 : vector<8x1xf32> to vector<8x512xf32>
      %27 = arith.addf %25, %26 : vector<8x512xf32>
      %c0_18 = arith.constant 0 : index
      %c0_19 = arith.constant 0 : index
      %28 = vector.load %arg7[%c0_18, %c0_19] : memref<8x512xf32, #tpu.memory_space<vmem>>, vector<8x512xf32>
      %c0_20 = arith.constant 0 : index
      %c0_21 = arith.constant 0 : index
      %29 = vector.load %arg8[%c0_20, %c0_21] : memref<8x512xf32, #tpu.memory_space<vmem>>, vector<8x512xf32>
      %30 = arith.subf %28, %29 : vector<8x512xf32>
      %31 = arith.subf %27, %30 : vector<8x512xf32>
      %32 = arith.mulf %31, %31 : vector<8x512xf32>
      %cst_22 = arith.constant dense<0.000000e+00> : vector<8xf32>
      %33 = vector.multi_reduction <add>, %32, %cst_22 [1] : vector<8x512xf32> to vector<8xf32>
      %34 = vector.shape_cast %33 : vector<8xf32> to vector<8x1xf32>
      %c0_23 = arith.constant 0 : index
      %c0_24 = arith.constant 0 : index
      %c0_25 = arith.constant 0 : index
      %35 = vector.load %arg9[%c0_23, %c0_24, %c0_25] : memref<1x8x1xf32, #tpu.memory_space<vmem>>, vector<1x8x1xf32>
      %36 = vector.shape_cast %35 : vector<1x8x1xf32> to vector<8x1xf32>
      %37 = vector.shape_cast %34 : vector<8x1xf32> to vector<1x8x1xf32>
      tpu.vector_store %arg9[%c0_23, %c0_24, %c0_25], %37 {strides = array<i32>} : memref<1x8x1xf32, #tpu.memory_space<vmem>>, vector<1x8x1xf32>,
    } else {
    }
    return
  }
  func.func @transform_0(%arg0: i32, %arg1: i32) -> (i32, i32) {
    %c0_i32 = arith.constant 0 : i32
    %c0_i32_0 = arith.constant 0 : i32
    return %c0_i32, %arg1 : i32, i32
  }
  func.func @transform_1(%arg0: i32, %arg1: i32) -> (i32, i32) {
    %c0_i32 = arith.constant 0 : i32
    %c0_i32_0 = arith.constant 0 : i32
    return %c0_i32, %arg1 : i32, i32
  }
  func.func @transform_2(%arg0: i32, %arg1: i32) -> (i32, i32) {
    %c0_i32 = arith.constant 0 : i32
    %c0_i32_0 = arith.constant 0 : i32
    %c0_i32_1 = arith.constant 0 : i32
    return %c0_i32, %c0_i32_0 : i32, i32
  }
  func.func @transform_3(%arg0: i32, %arg1: i32) -> (i32, i32) {
    %c0_i32 = arith.constant 0 : i32
    return %arg1, %arg0 : i32, i32
  }
  func.func @transform_4(%arg0: i32, %arg1: i32) -> (i32, i32) {
    %c0_i32 = arith.constant 0 : i32
    %c0_i32_0 = arith.constant 0 : i32
    return %c0_i32, %arg0 : i32, i32
  }
  func.func @transform_5(%arg0: i32, %arg1: i32) -> (i32, i32) {
    %c0_i32 = arith.constant 0 : i32
    %c0_i32_0 = arith.constant 0 : i32
    return %c0_i32, %arg0 : i32, i32
  }
  func.func @transform_6(%arg0: i32, %arg1: i32) -> (i32, i32) {
    %c0_i32 = arith.constant 0 : i32
    %c0_i32_0 = arith.constant 0 : i32
    return %c0_i32, %arg0 : i32, i32
  }
  func.func @transform_7(%arg0: i32, %arg1: i32) -> (i32, i32, i32) {
    %c0_i32 = arith.constant 0 : i32
    %c0_i32_0 = arith.constant 0 : i32
    %c0_i32_1 = arith.constant 0 : i32
    return %arg0, %c0_i32, %c0_i32_0 : i32, i32, i32
  }
}

</mosaic_0001>

<bundles_post_ra>
// kernel: tpu_custom_call.1
= control target key start
LH: loop header
LB: loop body
LE: loop exit
PB: predicated region body
PF: predicated region fallthrough
CT: control target
= control target key end

     0   :  { %s3145_s0 = inlined_call_operand.hbm [shape: f32[8,1024], index: 0, kind: input, shape index: {}]   ;;  %s3146_s1 = inlined_call_operand.hbm [shape: f32[8,1024], index: 1, kind: input, shape index: {}]   ;;  %s3147_s2 = inlined_call_operand.vmem [shape: f32[8,1], index: 2, kind: input, shape index: {}]   ;;  %s3148_s3 = inlined_call_operand.hbm [shape: bf16[1024,1024], index: 3, kind: input, shape index: {}]   ;;  %s3149_s4 = inlined_call_operand.hbm [shape: f32[1,1024], index: 4, kind: input, shape index: {}]   ;;  %s3150_s5 = inlined_call_operand.hbm [shape: f32[8,1024], index: 5, kind: input, shape index: {}]   ;;  %s3151_s6 = inlined_call_operand.hbm [shape: f32[8,1024], index: 6, kind: input, shape index: {}]   ;;  %s3152_s7 = inlined_call_operand.vmem [shape: f32[2,8,1], index: 7, kind: output, shape index: {}]  }
   0x1   :  { %3175 = sst [smem:[#allocation32_spill]] %s3146_s1 }
   0x2   :  { %3176 = sst [smem:[#allocation33_spill]] %s3147_s2 }
   0x3   :  { %3177 = sst [smem:[#allocation34_spill]] %s3148_s3 }
   0x4   :  { %3178 = sst [smem:[#allocation35_spill]] %s3149_s4 }
   0x5   :  { %3179 = sst [smem:[#allocation36_spill]] %s3152_s7 }
   0x6   :  { %12 = vsyncpa [#allocation4], 0 }
   0x7   :  { %14 = vsyncpa [#allocation4 + $0x1], 0 }
   0x8   :  { %15 = vsyncpa [#allocation6], 0 }
   0x9   :  { %17 = vsyncpa [#allocation6 + $0x1], 0 }
   0xa   :  { %18 = vsyncpa [#allocation9], 0 }
   0xb   :  { %20 = vsyncpa [#allocation9 + $0x1], 0 }
   0xc   :  { %21 = vsyncpa [#allocation12], 0 }
   0xd   :  { %23 = vsyncpa [#allocation12 + $0x1], 0  ;;  %s2609_s24 = smov 0   ;;  %s2611_s25 = smov 0  }
   0xe   :  { %s2613_s26 = smov 0   ;;  %s2615_s27 = smov 0  }
   0xf   :  { %s2617_s28 = smov 0   ;;  %s2619_s29 = smov 0  }
  0x10   :  { %s2621_s30 = smov 0   ;;  %s2623_s8 = smov 0  }
  0x11   :  { %s2625_s9 = smov 0   ;;  %s2627_s10 = smov 0  }
  0x12   :  { %s2629_s11 = smov 0   ;;  %s2631_s12 = smov 0  }
  0x13   :  { %s2633_s13 = smov 0   ;;  %s2635_s14 = smov 0  }
  0x14 LB: > { %3180 = sst [smem:[#allocation18_spill]] %s2512_s26  ;;  %s3154_s15 = sadd.s32 4294967295, %s2556_s14   ;;  %s2556_s14 = sphi %s2635_s14, %s29_s14   ;;  %s2552_s13 = sphi %s2633_s13, %s3247_s13   ;;  %s2548_s12 = sphi %s2631_s12, %s3236_s12   ;;  %s2544_s11 = sphi %s2629_s11, %s3246_s11   ;;  %s2540_s10 = sphi %s2627_s10, %s3235_s10   ;;  %s2536_s9 = sphi %s2625_s9, %s3245_s9   ;;  %s2532_s8 = sphi %s2623_s8, %s3244_s8   ;;  %s2528_s30 = sphi %s2621_s30, %s3233_s30   ;;  %s2524_s29 = sphi %s2619_s29, %s3243_s29   ;;  %s2520_s28 = sphi %s2617_s28, %s3242_s28   ;;  %s2516_s27 = sphi %s2615_s27, %s3231_s27   ;;  %s2512_s26 = sphi %s2613_s26, %s3241_s26   ;;  %s2508_s25 = sphi %s2611_s25, %s3240_s25   ;;  %s2504_s24 = sphi %s2609_s24, %s3239_s24  }
  0x15   : > { %3181 = sst [smem:[#allocation19_spill]] %s2520_s28  ;;  %s38_s16 = sadd.s32 1, %s2548_s12 }
  0x16   : > { %3182 = sst [smem:[#allocation20_spill]] %s2532_s8  ;;  %p39_p0 = scmp.ge.s32.totalorder %s38_s16, 2 }
  0x17   : > { %3183 = sst [smem:[#allocation21_spill]] %s2540_s10  ;;  %s41_s17 = sadd.s32 1, %s2552_s13 }
  0x18   : > { %3184 = sst [smem:[#allocation22_spill]] %s2544_s11  ;;  %s48_s18 = sadd.s32 1, %s2536_s9 }
  0x19   : > { %3185 = sst [smem:[#allocation23_spill]] %s2548_s12  ;;  %p55_p1 = scmp.ne.s32.totalorder %s2536_s9, %s2532_s8 }
  0x1a   : > { %s3249_s16 = smov (%p39_p0, %s38_s16), 0  ;;  %s3251_s17 = smov (!%p39_p0, %s41_s17), %s2552_s13 }
  0x1b   : > { %3186 = sst [smem:[#allocation24_spill]] %s3249_s16  ;;  %s45_s19 = ssub.s32 %s2548_s12, %s3249_s16 }
  0x1c   : > { %p3165_p2 = scmp.eq.s32.totalorder %s2556_s14, 0  ;;  %p43_p3 = scmp.ge.s32.totalorder %s3251_s17, 2 }
  0x1d   : > { %p46_p4 = scmp.eq.s32.totalorder %s45_s19, 0  ;;  %p61_p6 = scmp.ne.s32.totalorder %s2532_s8, %s2528_s30 }
  0x1e   : > { %p2691_p5 = por %p3165_p2, %p55_p1  ;;  %s3253_s17 = smov (%p43_p3, %s3251_s17), 0 }
  0x1f   : > { %3188 = sst [smem:[#allocation25_spill]] %s3253_s17  ;;  %p2703_p7 = scmp.eq.s32.totalorder %s3154_s15, 0 }
  0x20   : > { %s2699_s21 = scalar_select %p46_p4, %s2536_s9, %s48_s18  }
  0x21   : > { %s2709_s23 = ssub.s32 %s2552_s13, %s3253_s17  ;;  %s123_s16 = sadd.s32 1, %s2524_s29 }
  0x22   : > { %3189 = sst [smem:[#allocation26_spill]] %s2699_s21  ;;  %s120_s30 = sor.u32 %s2709_s23, %s45_s19 }
  0x23   : > { %p2715_p8 = por %p2703_p7, %p61_p6  ;;  %p121_p9 = scmp.eq.s32.totalorder %s120_s30, 0 }
  0x24   : > { %p130_p10 = scmp.ne.s32.totalorder %s2524_s29, %s2520_s28  ;;  %p136_p11 = scmp.ne.s32.totalorder %s2520_s28, %s2516_s27 }
  0x25   : > { %s3191_s18 = scalar_select %p2715_p8, 1, 0 }
  0x26   : > { %s2724_s15 = scalar_select %p121_p9, %s2524_s29, %s123_s16  }
  0x27   : > { %3192 = sst [smem:[#allocation27_spill]] %s3191_s18  ;;  %p2728_p12 = por %p130_p10, %p3165_p2 }
  0x28   : > { %3193 = sst [smem:[#allocation28_spill]] %s2724_s15  ;;  %p2734_p13 = por %p136_p11, %p2703_p7 }
  0x29   : > { %p3167_p1 = scmp.lt.s32.totalorder %s2556_s14, 4  ;;  %s3156_s21 = sand.u32 1, %s2536_s9  }
  0x2a   : > { %s3195_s19 = scalar_select %p2734_p13, 1, 0 }
  0x2b   : > { %s2743_s30 = sshll.u32 %s3156_s21, 5  ;;  %s2746_s27 = sshll.u32 %s2548_s12, 9 }
  0x2c   : > { %3196 = sst [smem:[#allocation29_spill]] %s3195_s19  ;;  %p2752_p3 = pnand %p3167_p1, %p2691_p5 }
  0x2d   : > { %s3168_s15 = sand.u32 1, %s2556_s14   ;;  %s3198_s1 = sld [smem:[#allocation32_spill]] }
  0x2e   : > { %s290_s21 = scalar_lea.vmem [#allocation5], %s2743_s30  ;;  %s1758_s19 = sshll.u32 %s2552_s13, 2 }
  0x2f   : > { %s298_s11 = sshll.u32 %s290_s21, 4  ;;  %s316_s12 = sadd.s32 %s2746_s27, %s1758_s19  ;;  %s299_s11 = int_to_ptr.vmem [resolvable:$true] %s298_s11 }
  0x30   : > { %s2766_s20 = scalar_lea.sflag [#allocation6], %s3168_s15  ;;  %p3166_p4 = pneg %p2752_p3 }
  0x31   : > { %s2271_s28 = scalar_lea.vmem %s299_s11, 512  ;;  %s2558_s18 = smov [#allocation5]  }
  0x32   : > { %p2272_p5 = scmp.ne.s32.totalorder %s299_s11, %s2271_s28  ;;  %s2276_s8 = sshll.u32 %s2558_s18, 4  ;;  %s2277_s8 = int_to_ptr.vmem [resolvable:$false] %s2276_s8 }
  0x33   : > { %s296_s7 = scalar_lea.hbm %s3198_s1, %s2746_s27  ;;  %s2278_s2 = scalar_lea.vmem %s2277_s8, 1024 }
  0x34   : > { %p2274_p6 = pnand %p2272_p5, %p3166_p4  ;;  %p2279_p10 = scmp.lt.s32.totalorder %s299_s11, %s2277_s8 }
  0x35   : > { %p2280_p11 = scmp.lt.s32.totalorder %s2278_s2, %s2271_s28 }
  0x36   : > { %p2275_p9 = pneg %p2274_p6 }
  0x37   : > { %p2281_p2 = por %p2280_p11, %p2279_p10 }
  0x39   : > { %p2282_p0 = pnand %p2281_p2, %p2275_p9 }
  0x3b   : > { %2285 = shalt.err (!%p2282_p0)
}
  0x3c   : > { %1934 = dma.hbm_to_vmem [thread:$0]  (!%p2752_p3), %s296_s7, 512, %s299_s11, %s2766_s20  }
  0x3d   : > { %s1760_s28 = sshll.u32 %s316_s12, 6  ;;  %p2780_p2 = pnand %p3167_p1, %p2728_p12 }
  0x3e   : > { %s3200_s3 = sld [smem:[#allocation34_spill]]  ;;  %p1770_p0 = scmp.ge.s32.totalorder %s2556_s14, 1 }
  0x3f   : > { %p384_p5 = scmp.lt.s32.totalorder %s2556_s14, 5  ;;  %s149_s7 = sadd.s32 1, %s2512_s26 }
  0x40   : > { %p3202_p9 = scmp.eq.s32.totalorder %s2709_s23, 0  ;;  %p156_p12 = scmp.ne.s32.totalorder %s2512_s26, %s2508_s25 }
  0x41   : > { %p2791_p6 = pnand %p1770_p0, %p384_p5  ;;  %p162_p10 = scmp.ne.s32.totalorder %s2508_s25, %s2504_s24 }
  0x42   : > { %s2799_s11 = scalar_select %p3202_p9, %s2512_s26, %s149_s7  }
  0x43   : > { %s2806_s12 = sand.u32 1, %s2512_s26   ;;  %p3204_p11 = scmp.eq.s32.totalorder %s2556_s14, 0 }
  0x44   : > { %s2787_s18 = scalar_lea.hbm %s3200_s3, %s1760_s28  ;;  %3203 = sst [smem:[#allocation30_spill]] %s2799_s11 }
  0x45   : > { %p158_p4 = por %p156_p12, %p3204_p11  ;;  %p2812_p1 = por %p162_p10, %p2703_p7 }
  0x46   : > { %s1761_s2 = sshll.u32 %s2806_s12, 2  ;;  %s1913_s28 = sshll.u32 %s2552_s13, 6 }
  0x47   : > { %s3205_s17 = scalar_select %p2812_p1, 1, 0 }
  0x48   : > { %s3207_s4 = sld [smem:[#allocation35_spill]]  ;;  %s333_s7 = scalar_lea.vmem [#allocation8], %s1761_s2 }
  0x49   : > { %3206 = sst [smem:[#allocation31_spill]] %s3205_s17  ;;  %s341_s15 = sshll.u32 %s333_s7, 4  ;;  %s342_s15 = int_to_ptr.vmem [resolvable:$true] %s341_s15 }
  0x4a   : > { %p3208_p0 = scmp.lt.s32.totalorder %s2556_s14, 4  ;;  %s3210_s22 = sand.u32 1, %s2556_s14  }
  0x4b   : > { %s2829_s1 = scalar_lea.sflag [#allocation9], %s3210_s22  ;;  %s2299_s3 = scalar_lea.vmem %s342_s15, 64 }
  0x4c   : > { %p2823_p5 = pnand %p3208_p0, %p158_p4  ;;  %p2300_p9 = scmp.ne.s32.totalorder %s342_s15, %s2299_s3 }
  0x4d   : > { %s2559_s2 = smov [#allocation8]  }
  0x4e   : > { %s339_s23 = scalar_lea.hbm %s3207_s4, %s1913_s28  ;;  %p3173_p7 = pneg %p2823_p5 }
  0x4f   : > { %s2304_s28 = sshll.u32 %s2559_s2, 4  ;;  %s2305_s28 = int_to_ptr.vmem [resolvable:$false] %s2304_s28 }
  0x50   : > { %p2302_p12 = pnand %p2300_p9, %p3173_p7  ;;  %s2306_s10 = scalar_lea.vmem %s2305_s28, 128 }
  0x51   : > { %p2307_p4 = scmp.lt.s32.totalorder %s342_s15, %s2305_s28  ;;  %p2308_p11 = scmp.lt.s32.totalorder %s2306_s10, %s2299_s3 }
  0x52   : > { %p2303_p10 = pneg %p2302_p12 }
  0x53   : > { %p2309_p0 = por %p2308_p11, %p2307_p4 }
  0x55   : > { %p2310_p1 = pnand %p2309_p0, %p2303_p10 }
  0x57   : > { %2313 = shalt.err (!%p2310_p1)
}
  0x58   : > { %1940 = dma.hbm_to_vmem [thread:$0]  (!%p2823_p5), %s339_s23, 64, %s342_s15, %s2829_s1  }
  0x59   : > { %s277_s22 = scalar_lea.hbm %s3145_s0, %s2746_s27  ;;  %s271_s2 = scalar_lea.vmem [#allocation3], %s2743_s30 }
  0x5a   : > { %s279_s4 = sshll.u32 %s271_s2, 4  ;;  %s307_s3 = sand.u32 1, %s2524_s29   ;;  %s280_s4 = int_to_ptr.vmem [resolvable:$true] %s279_s4 }
  0x5b   : > { %s3211_s28 = sand.u32 1, %s2536_s9   ;;  %s2327_s11 = scalar_lea.vmem %s280_s4, 512 }
  0x5c   : > { %s268_s10 = scalar_lea.sflag [#allocation4], %s3211_s28  ;;  %p2328_p1 = scmp.ne.s32.totalorder %s280_s4, %s2327_s11 }
  0x5d   : > { %p3212_p9 = pneg %p2752_p3  ;;  %s2560_s26 = smov [#allocation3]  }
  0x5e   : > { %s2332_s17 = sshll.u32 %s2560_s26, 4  ;;  %s2333_s17 = int_to_ptr.vmem [resolvable:$false] %s2332_s17 }
  0x5f   : > { %p2330_p12 = pnand %p2328_p1, %p3212_p9  ;;  %s2334_s15 = scalar_lea.vmem %s2333_s17, 1024 }
  0x60   : > { %p2335_p4 = scmp.lt.s32.totalorder %s280_s4, %s2333_s17  ;;  %p2336_p11 = scmp.lt.s32.totalorder %s2334_s15, %s2327_s11 }
  0x61   : > { %p2331_p10 = pneg %p2330_p12 }
  0x62   : > { %p2337_p0 = por %p2336_p11, %p2335_p4 }
  0x64   : > { %p2338_p7 = pnand %p2337_p0, %p2331_p10 }
  0x66   : > { %2341 = shalt.err (!%p2338_p7)
}
  0x67   : > { %1931 = dma.hbm_to_vmem [thread:$0]  (!%p2752_p3), %s277_s22, 512, %s280_s4, %s268_s10  }
  0x68   : > { %s1756_s30 = sshll.u32 %s307_s3, 10  ;;  %s1764_s21 = sshll.u32 %s2806_s12, 5 }
  0x69   : > { %s309_s27 = scalar_lea.vmem [#allocation7], %s1756_s30  ;;  %p2344_p1 = pneg %p2780_p2 }
  0x6a   : > { %s319_s23 = sshll.u32 %s309_s27, 4  ;;  %s2561_s11 = smov [#allocation7]   ;;  %s320_s23 = int_to_ptr.vmem [resolvable:$true] %s319_s23 }
  0x6b   : > { %s2355_s26 = scalar_lea.vmem %s320_s23, 16384  ;;  %s2360_s17 = sshll.u32 %s2561_s11, 4  ;;  %s2361_s17 = int_to_ptr.vmem [resolvable:$false] %s2360_s17 }
  0x6c   : > { %p2356_p9 = scmp.ne.s32.totalorder %s320_s23, %s2355_s26  ;;  %s2362_s7 = scalar_lea.vmem %s2361_s17, 32768 }
  0x6d   : > { %p2363_p7 = scmp.lt.s32.totalorder %s320_s23, %s2361_s17  ;;  %p2364_p10 = scmp.lt.s32.totalorder %s2362_s7, %s2355_s26 }
  0x6e   : > { %p2358_p12 = pnand %p2356_p9, %p2344_p1 }
  0x6f   : > { %p2365_p4 = por %p2364_p10, %p2363_p7 }
  0x70   : > { %p2359_p13 = pneg %p2358_p12 }
  0x72   : > { %p2366_p11 = pnand %p2365_p4, %p2359_p13 }
  0x74   : > { %2369 = shalt.err (!%p2366_p11)
}
  0x75   : > { %s2562_s4 = smov 512   ;;  %s2563_s16 = smov 256  }
  0x76   : > { %s2564_s22 = smov 16   ;;  %s1914_s2 = sshll.u32 %s2552_s13, 9 }
  0x77   : > { %1937 = dma.hbm_to_vmem [thread:$0]  (!%p2780_p2), %s2787_s18, 16384, %s320_s23, %s2766_s20, %s2562_s4, %s2563_s16, %s2564_s22  }
  0x78   : > { %s358_s10 = scalar_lea.hbm %s3150_s5, %s1914_s2  ;;  %s352_s15 = scalar_lea.vmem [#allocation10], %s1764_s21 }
  0x79   : > { %s360_s30 = sshll.u32 %s352_s15, 4  ;;  %p3213_p3 = pneg %p2823_p5  ;;  %s361_s30 = int_to_ptr.vmem [resolvable:$true] %s360_s30 }
  0x7a   : > { %s2383_s27 = scalar_lea.vmem %s361_s30, 512  ;;  %s2565_s26 = smov [#allocation10]  }
  0x7b   : > { %p2384_p13 = scmp.ne.s32.totalorder %s361_s30, %s2383_s27  ;;  %s2388_s11 = sshll.u32 %s2565_s26, 4  ;;  %s2389_s11 = int_to_ptr.vmem [resolvable:$false] %s2388_s11 }
  0x7c   : > { %s2390_s8 = scalar_lea.vmem %s2389_s11, 1024  ;;  %p2391_p2 = scmp.lt.s32.totalorder %s361_s30, %s2389_s11 }
  0x7d   : > { %p2386_p0 = pnand %p2384_p13, %p3213_p3  ;;  %p2392_p9 = scmp.lt.s32.totalorder %s2390_s8, %s2383_s27 }
  0x7f   : > { %p2387_p1 = pneg %p2386_p0  ;;  %p2393_p12 = por %p2392_p9, %p2391_p2 }
  0x81   : > { %p2394_p7 = pnand %p2393_p12, %p2387_p1 }
  0x83   : > { %2397 = shalt.err (!%p2394_p7)
}
  0x84   : > { %1943 = dma.hbm_to_vmem [thread:$0]  (!%p2823_p5), %s358_s10, 512, %s361_s30, %s2829_s1  }
  0x85   : > { %s377_s23 = scalar_lea.hbm %s3151_s6, %s1914_s2  ;;  %s371_s17 = scalar_lea.vmem [#allocation11], %s1764_s21 }
  0x86   : > { %s379_s7 = sshll.u32 %s371_s17, 4  ;;  %s368_s4 = scalar_lea.sflag [#allocation12], %s2806_s12  ;;  %s380_s7 = int_to_ptr.vmem [resolvable:$true] %s379_s7 }
  0x87   : > { %s2411_s16 = scalar_lea.vmem %s380_s7, 512  ;;  %p3214_p4 = pmov %p3213_p3 }
  0x88   : > { %p2412_p10 = scmp.ne.s32.totalorder %s380_s7, %s2411_s16  ;;  %s2566_s22 = smov [#allocation11]  }
  0x89   : > { %s2416_s3 = sshll.u32 %s2566_s22, 4  ;;  %s2417_s3 = int_to_ptr.vmem [resolvable:$false] %s2416_s3 }
  0x8a   : > { %p2414_p11 = pnand %p2412_p10, %p3214_p4  ;;  %s2418_s28 = scalar_lea.vmem %s2417_s3, 1024 }
  0x8b   : > { %p2419_p3 = scmp.lt.s32.totalorder %s380_s7, %s2417_s3  ;;  %p2420_p0 = scmp.lt.s32.totalorder %s2418_s28, %s2411_s16 }
  0x8c   : > { %p2415_p13 = pneg %p2414_p11 }
  0x8d   : > { %p2421_p1 = por %p2420_p0, %p2419_p3 }
  0x8f   : > { %p2422_p2 = pnand %p2421_p1, %p2415_p13 }
  0x91   : > { %2425 = shalt.err (!%p2422_p2)
}
  0x92   : > { %1946 = dma.hbm_to_vmem [thread:$0]  (!%p2823_p5), %s377_s23, 512, %s380_s7, %s368_s4  }
  0x93   : > { %388 = sbr.rel (%p2791_p6) target bundleno = 764 (0x2fc), region = 48  ;;  %s3215_s1 = sld [smem:[#allocation20_spill]] (!%p2791_p6) }
  0x99   : > { %s390_s21 = sand.u32 1, %s3215_s1  }
  0x9a   : > { %s1771_s2 = sshll.u32 %s390_s21, 5  ;;  %s391_s10 = scalar_lea.sflag [#allocation4], %s390_s21 }
  0x9b   : > { %s2885_s15 = scalar_lea.vmem [#allocation3], %s1771_s2 }
  0x9c   : > { %2483 = dma.done.wait (%p2715_p8), %s391_s10, 512  }
  0x9d   : > { %2485 = vsyncadd (%p2715_p8), %s391_s10, 4294966784  ;;  %s3217_s30 = sadd.s32 4294967295, %s2556_s14   ;;  %s2893_s26 = scalar_lea.vmem [#allocation5], %s1771_s2 }
  0x9e   : > { %s399_s24 = sand.u32 1, %s3217_s30  }
  0x9f   : > { %s400_s27 = scalar_lea.sflag [#allocation6], %s399_s24 }
  0xa0   : > { %2487 = dma.done.wait (%p2715_p8), %s400_s27, 512  }
  0xa1   : > { %2489 = vsyncadd (%p2715_p8), %s400_s27, 4294966784  ;;  %s3218_s19 = sld [smem:[#allocation19_spill]] }
  0xa2   : > { %s3219_s11 = sld [smem:[#allocation29_spill]] }
  0xa7   : > { %s410_s8 = sand.u32 1, %s3218_s19  }
  0xa8   : > { %s1773_s20 = sshll.u32 %s410_s8, 10  ;;  %p3220_p6 = scmp.ne.s32.totalorder %s3219_s11, 0 }
  0xa9   : > { %s2900_s18 = scalar_lea.vmem [#allocation7], %s1773_s20 }
  0xaa   : > { %2491 = dma.done.wait (%p3220_p6), %s400_s27, 16384  }
  0xab   : > { %2493 = vsyncadd (%p3220_p6), %s400_s27, 4294950912  ;;  %s3221_s23 = sld [smem:[#allocation31_spill]]  ;;  %s419_s17 = sand.u32 1, %s2508_s25  }
  0xac   : > { %s1774_s7 = sshll.u32 %s419_s17, 2  ;;  %s418_s4 = scalar_lea.sflag [#allocation9], %s399_s24 }
  0xad   : > { %s2907_s16 = scalar_lea.vmem [#allocation8], %s1774_s7 }
  0xb1   : > { %p3222_p5 = scmp.ne.s32.totalorder %s3221_s23, 0 }
  0xb3   : > { %2495 = dma.done.wait (%p3222_p5), %s418_s4, 576  }
  0xb4   : > { %2497 = vsyncadd (%p3222_p5), %s418_s4, 4294966720  ;;  %s1775_s22 = sshll.u32 %s419_s17, 5  ;;  %s436_s28 = scalar_lea.sflag [#allocation12], %s419_s17 }
  0xb5   : > { %s2913_s3 = scalar_lea.vmem [#allocation10], %s1775_s22  ;;  %s2915_s1 = scalar_lea.vmem [#allocation11], %s1775_s22 }
  0xb6   : > { %2499 = dma.done.wait (%p3222_p5), %s436_s28, 512  }
  0xb7   : > { %2501 = vsyncadd (%p3222_p5), %s436_s28, 4294966784  ;;  %s3223_s12 = sld [smem:[#allocation22_spill]] }
  0xb8   : > { %s3224_s30 = sld [smem:[#allocation36_spill]] }
  0xb9   : > { %s3225_s11 = sld [smem:[#allocation33_spill]] }
  0xba   : > { %s3226_s8 = sld [smem:[#allocation21_spill]] }
  0xbd   : > { %p501_p8 = scmp.lt.s32.totalorder %s3223_s12, 1 }
  0xbf   : > { %s3255_s12 = smov (!%p501_p8, %s3223_s12), 1  ;;  %v505_v0 = vld [vmem:[%s3225_s11] sm:$0xff] }
  0xc0   : > { %s1777_s21 = sshll.u32 %s3255_s12, 3  ;;  %p1778_p9 = scmp.ne.s32.totalorder %s3226_s8, 0 }
  0xc1   : > { %s2926_s24 = scalar_lea.vmem %s3224_s30, %s1777_s21 }
  0xc2   : > { %509 = sbr.rel (%p1778_p9) target bundleno = 202 (0xca), region = 76 }
  0xc7   : > { %v2567_v1 = vmov 0.0  }
  0xc8   : > { %510 = vst [vmem:[#allocation2 + $0x10] sm:$0xff] %v2567_v1  ;;  %511 = vst [vmem:[#allocation2] sm:$0xff] %v2567_v1 }
  0xc9   : > { %512 = vst [vmem:[#allocation2 + $0x18] sm:$0xff] %v2567_v1  ;;  %513 = vst [vmem:[#allocation2 + $0x8] sm:$0xff] %v2567_v1 }
  0xca PF: > { %v2066_v2 = vld [vmem:[%s2900_s18 + $0xe4] ss:$16 sps:$4 sm:$0xff]   ;;  %v2568_v3 = vmov 0   ;;  %v527_v5 = vsub.f32 1.0, %v505_v0  ;;  %v2070_v6 = vld [vmem:[%s2900_s18 + $0xe0] ss:$16 sps:$4 sm:$0xff]  }
  0xcb   : > { %2065 = vset.pattern.permute.xlu0 %v2568_v3  ;;  %v2068_v4 = vld [vmem:[%s2900_s18 + $0x2e4] ss:$16 sps:$4 sm:$0xff]   ;;  %1321 = vmatprep.subr.bf16.mxu0 %v2066_v2  ;;  %v2071_v7 = vld [vmem:[%s2900_s18 + $0x2e0] ss:$16 sps:$4 sm:$0xff]  }
  0xcc   : > { %520 = vperm.xlu0 %2065, %v505_v0   ;;  %1362 = vmatprep.subr.bf16.mxu1 %v2068_v4  ;;  %v2072_v8 = vld [vmem:[%s2900_s18 + $0xc4] ss:$16 sps:$4 sm:$0xff]   ;;  %v2076_v10 = vld [vmem:[%s2900_s18 + $0xc0] ss:$16 sps:$4 sm:$0xff]   ;;  %v2164_v4 = vld [vmem:[%s2900_s18 + $0xec] ss:$16 sps:$4 sm:$0xff]  }
  0xcd   : > { %1322 = vmatpush1.bf16.msra.mxu0 %v2070_v6  ;;  %1363 = vmatpush1.bf16.msra.mxu1 %v2071_v7  ;;  %v2074_v9 = vld [vmem:[%s2900_s18 + $0x2c4] ss:$16 sps:$4 sm:$0xff]   ;;  %v2077_v11 = vld [vmem:[%s2900_s18 + $0x2c0] ss:$16 sps:$4 sm:$0xff]  }
  0xce   : > { %1323 = vmatprep.subr.bf16.mxu0 %v2072_v8  ;;  %1364 = vmatprep.subr.bf16.mxu1 %v2074_v9  ;;  %v2078_v12 = vld [vmem:[%s2900_s18 + $0xa4] ss:$16 sps:$4 sm:$0xff]   ;;  %v2082_v14 = vld [vmem:[%s2900_s18 + $0xa0] ss:$16 sps:$4 sm:$0xff]  }
  0xcf   : > { %v2080_v13 = vld [vmem:[%s2900_s18 + $0x2a4] ss:$16 sps:$4 sm:$0xff]   ;;  %v2083_v15 = vld [vmem:[%s2900_s18 + $0x2a0] ss:$16 sps:$4 sm:$0xff]  }
  0xd0   : > { %534 = vperm.xlu0 %2065, %v527_v5   ;;  %v2084_v16 = vld [vmem:[%s2900_s18 + $0x84] ss:$16 sps:$4 sm:$0xff]   ;;  %v2088_v18 = vld [vmem:[%s2900_s18 + $0x80] ss:$16 sps:$4 sm:$0xff]   ;;  %v2167_v5 = vld [vmem:[%s2900_s18 + $0x2ec] ss:$16 sps:$4 sm:$0xff]  }
  0xd1   : > { %1324 = vmatpush1.bf16.msra.mxu0 %v2076_v10  ;;  %1365 = vmatpush1.bf16.msra.mxu1 %v2077_v11  ;;  %v2086_v17 = vld [vmem:[%s2900_s18 + $0x284] ss:$16 sps:$4 sm:$0xff]   ;;  %v2089_v19 = vld [vmem:[%s2900_s18 + $0x280] ss:$16 sps:$4 sm:$0xff]   ;;  %v515_v10 = vld [vmem:[%s2885_s15 + $0x8] sm:$0xff] }
  0xd2   : > { %1325 = vmatprep.subr.bf16.mxu0 %v2078_v12  ;;  %1366 = vmatprep.subr.bf16.mxu1 %v2080_v13  ;;  %v2090_v20 = vld [vmem:[%s2900_s18 + $0x64] ss:$16 sps:$4 sm:$0xff]   ;;  %v2094_v22 = vld [vmem:[%s2900_s18 + $0x60] ss:$16 sps:$4 sm:$0xff]   ;;  %v517_v11 = vld [vmem:[%s2885_s15 + $0x18] sm:$0xff] }
  0xd3   : > { %v2092_v21 = vld [vmem:[%s2900_s18 + $0x264] ss:$16 sps:$4 sm:$0xff]   ;;  %v2095_v23 = vld [vmem:[%s2900_s18 + $0x260] ss:$16 sps:$4 sm:$0xff]   ;;  %v529_v12 = vld [vmem:[%s2893_s26 + $0x8] sm:$0xff] }
  0xd4   : > { %v2096_v24 = vld [vmem:[%s2900_s18 + $0x44] ss:$16 sps:$4 sm:$0xff]   ;;  %v2100_v26 = vld [vmem:[%s2900_s18 + $0x40] ss:$16 sps:$4 sm:$0xff]  }
  0xd5   : > { %1326 = vmatpush1.bf16.msra.mxu0 %v2082_v14  ;;  %1367 = vmatpush1.bf16.msra.mxu1 %v2083_v15  ;;  %v2098_v25 = vld [vmem:[%s2900_s18 + $0x244] ss:$16 sps:$4 sm:$0xff]   ;;  %v2101_v27 = vld [vmem:[%s2900_s18 + $0x240] ss:$16 sps:$4 sm:$0xff]   ;;  %v531_v14 = vld [vmem:[%s2893_s26 + $0x18] sm:$0xff] }
  0xd6   : > { %1327 = vmatprep.subr.bf16.mxu0 %v2084_v16  ;;  %1368 = vmatprep.subr.bf16.mxu1 %v2086_v17  ;;  %v2102_v28 = vld [vmem:[%s2900_s18 + $0x24] ss:$16 sps:$4 sm:$0xff]   ;;  %v2106_v30 = vld [vmem:[%s2900_s18 + $0x20] ss:$16 sps:$4 sm:$0xff]  }
  0xd7   : > { %v2104_v29 = vld [vmem:[%s2900_s18 + $0x224] ss:$16 sps:$4 sm:$0xff]   ;;  %v2107_v31 = vld [vmem:[%s2900_s18 + $0x220] ss:$16 sps:$4 sm:$0xff]  }
  0xd8   : > { %v2108_v32 = vld [vmem:[%s2900_s18 + $0x4] ss:$16 sps:$4 sm:$0xff]   ;;  %v2112_v34 = vld [vmem:[%s2900_s18] ss:$16 sps:$4 sm:$0xff]  }
  0xd9   : > { %1328 = vmatpush1.bf16.msra.mxu0 %v2088_v18  ;;  %1369 = vmatpush1.bf16.msra.mxu1 %v2089_v19  ;;  %v2110_v33 = vld [vmem:[%s2900_s18 + $0x204] ss:$16 sps:$4 sm:$0xff]   ;;  %v2113_v35 = vld [vmem:[%s2900_s18 + $0x200] ss:$16 sps:$4 sm:$0xff]  }
  0xda   : > { %1329 = vmatprep.subr.bf16.mxu0 %v2090_v20  ;;  %1370 = vmatprep.subr.bf16.mxu1 %v2092_v21  ;;  %v2114_v36 = vld [vmem:[%s2900_s18 + $0x1e4] ss:$16 sps:$4 sm:$0xff]   ;;  %v2118_v38 = vld [vmem:[%s2900_s18 + $0x1e0] ss:$16 sps:$4 sm:$0xff]  }
  0xdb   : > { %v2116_v37 = vld [vmem:[%s2900_s18 + $0x3e4] ss:$16 sps:$4 sm:$0xff]   ;;  %v2119_v39 = vld [vmem:[%s2900_s18 + $0x3e0] ss:$16 sps:$4 sm:$0xff]  }
  0xdc   : > { %v2120_v40 = vld [vmem:[%s2900_s18 + $0x1c4] ss:$16 sps:$4 sm:$0xff]   ;;  %v2124_v42 = vld [vmem:[%s2900_s18 + $0x1c0] ss:$16 sps:$4 sm:$0xff]  }
  0xdd   : > { %1330 = vmatpush1.bf16.msra.mxu0 %v2094_v22  ;;  %1371 = vmatpush1.bf16.msra.mxu1 %v2095_v23  ;;  %v2122_v41 = vld [vmem:[%s2900_s18 + $0x3c4] ss:$16 sps:$4 sm:$0xff]   ;;  %v2125_v43 = vld [vmem:[%s2900_s18 + $0x3c0] ss:$16 sps:$4 sm:$0xff]  }
  0xde   : > { %1331 = vmatprep.subr.bf16.mxu0 %v2096_v24  ;;  %1372 = vmatprep.subr.bf16.mxu1 %v2098_v25  ;;  %v2126_v44 = vld [vmem:[%s2900_s18 + $0x1a4] ss:$16 sps:$4 sm:$0xff]   ;;  %v2130_v46 = vld [vmem:[%s2900_s18 + $0x1a0] ss:$16 sps:$4 sm:$0xff]  }
  0xdf   : > { %v2128_v45 = vld [vmem:[%s2900_s18 + $0x3a4] ss:$16 sps:$4 sm:$0xff]   ;;  %v2131_v47 = vld [vmem:[%s2900_s18 + $0x3a0] ss:$16 sps:$4 sm:$0xff]  }
  0xe0   : > { %v2132_v48 = vld [vmem:[%s2900_s18 + $0x184] ss:$16 sps:$4 sm:$0xff]   ;;  %v2136_v50 = vld [vmem:[%s2900_s18 + $0x180] ss:$16 sps:$4 sm:$0xff]  }
  0xe1   : > { %1332 = vmatpush1.bf16.msra.mxu0 %v2100_v26  ;;  %1373 = vmatpush1.bf16.msra.mxu1 %v2101_v27  ;;  %v2134_v49 = vld [vmem:[%s2900_s18 + $0x384] ss:$16 sps:$4 sm:$0xff]   ;;  %v2137_v51 = vld [vmem:[%s2900_s18 + $0x380] ss:$16 sps:$4 sm:$0xff]  }
  0xe2   : > { %1333 = vmatprep.subr.bf16.mxu0 %v2102_v28  ;;  %1374 = vmatprep.subr.bf16.mxu1 %v2104_v29  ;;  %v2138_v52 = vld [vmem:[%s2900_s18 + $0x164] ss:$16 sps:$4 sm:$0xff]   ;;  %v2142_v54 = vld [vmem:[%s2900_s18 + $0x160] ss:$16 sps:$4 sm:$0xff]  }
  0xe3   : > { %v2140_v53 = vld [vmem:[%s2900_s18 + $0x364] ss:$16 sps:$4 sm:$0xff]   ;;  %v2143_v55 = vld [vmem:[%s2900_s18 + $0x360] ss:$16 sps:$4 sm:$0xff]  }
  0xe4   : > { %v2144_v56 = vld [vmem:[%s2900_s18 + $0x144] ss:$16 sps:$4 sm:$0xff]   ;;  %v2148_v58 = vld [vmem:[%s2900_s18 + $0x140] ss:$16 sps:$4 sm:$0xff]  }
  0xe5   : > { %1334 = vmatpush1.bf16.msra.mxu0 %v2106_v30  ;;  %1375 = vmatpush1.bf16.msra.mxu1 %v2107_v31  ;;  %v2146_v57 = vld [vmem:[%s2900_s18 + $0x344] ss:$16 sps:$4 sm:$0xff]   ;;  %v2149_v59 = vld [vmem:[%s2900_s18 + $0x340] ss:$16 sps:$4 sm:$0xff]   ;;  %v2162_v30 = vld [vmem:[%s2900_s18 + $0xe8] ss:$16 sps:$4 sm:$0xff]  }
  0xe6   : > { %1335 = vmatprep.subr.bf16.mxu0 %v2108_v32  ;;  %1376 = vmatprep.subr.bf16.mxu1 %v2110_v33  ;;  %v2150_v60 = vld [vmem:[%s2900_s18 + $0x124] ss:$16 sps:$4 sm:$0xff]   ;;  %v2154_v62 = vld [vmem:[%s2900_s18 + $0x120] ss:$16 sps:$4 sm:$0xff]   ;;  %v2165_v31 = vld [vmem:[%s2900_s18 + $0x2e8] ss:$16 sps:$4 sm:$0xff]  }
  0xe7   : > { %v2152_v61 = vld [vmem:[%s2900_s18 + $0x324] ss:$16 sps:$4 sm:$0xff]   ;;  %v2155_v63 = vld [vmem:[%s2900_s18 + $0x320] ss:$16 sps:$4 sm:$0xff]  }
  0xe8   : > { %v2156_v0 = vld [vmem:[%s2900_s18 + $0x104] ss:$16 sps:$4 sm:$0xff]   ;;  %v2160_v2 = vld [vmem:[%s2900_s18 + $0x100] ss:$16 sps:$4 sm:$0xff]  }
  0xe9   : > { %1336 = vmatpush1.bf16.msra.mxu0 %v2112_v34  ;;  %1377 = vmatpush1.bf16.msra.mxu1 %v2113_v35  ;;  %v2158_v1 = vld [vmem:[%s2900_s18 + $0x304] ss:$16 sps:$4 sm:$0xff]   ;;  %v2161_v3 = vld [vmem:[%s2900_s18 + $0x300] ss:$16 sps:$4 sm:$0xff]   ;;  %v2170_v34 = vld [vmem:[%s2900_s18 + $0xcc] ss:$16 sps:$4 sm:$0xff]  }
  0xea   : > { %1337 = vmatprep.subr.bf16.mxu0 %v2114_v36  ;;  %1378 = vmatprep.subr.bf16.mxu1 %v2116_v37  ;;  %v514_v7 = vld [vmem:[%s2885_s15] sm:$0xff]  ;;  %v516_v8 = vld [vmem:[%s2885_s15 + $0x10] sm:$0xff]  ;;  %v2173_v35 = vld [vmem:[%s2900_s18 + $0x2cc] ss:$16 sps:$4 sm:$0xff]   ;;  %s3227_s15 = sld [smem:[#allocation21_spill]] }
  0xeb   : > { %v528_v9 = vld [vmem:[%s2893_s26] sm:$0xff]  ;;  %v530_v13 = vld [vmem:[%s2893_s26 + $0x10] sm:$0xff]  ;;  %v2168_v36 = vld [vmem:[%s2900_s18 + $0xc8] ss:$16 sps:$4 sm:$0xff]  }
  0xec   : > { %v2171_v37 = vld [vmem:[%s2900_s18 + $0x2c8] ss:$16 sps:$4 sm:$0xff]  }
  0xed   : > { %1338 = vmatpush2.bf16.msra.mxu0 %v2118_v38  ;;  %1379 = vmatpush2.bf16.msra.mxu1 %v2119_v39  ;;  %v2176_v38 = vld [vmem:[%s2900_s18 + $0xac] ss:$16 sps:$4 sm:$0xff]  }
  0xee   : > { %1339 = vmatprep.subr.bf16.mxu0 %v2120_v40  ;;  %1380 = vmatprep.subr.bf16.mxu1 %v2122_v41  ;;  %v2179_v39 = vld [vmem:[%s2900_s18 + $0x2ac] ss:$16 sps:$4 sm:$0xff]   ;;  %v2174_v40 = vld [vmem:[%s2900_s18 + $0xa8] ss:$16 sps:$4 sm:$0xff]  }
  0xef   : > { %v2177_v41 = vld [vmem:[%s2900_s18 + $0x2a8] ss:$16 sps:$4 sm:$0xff]  }
  0xf0   : > { %p1907_p12 = scmp.ne.s32.totalorder %s3227_s15, 1 }
  0xf1   : > { %1340 = vmatpush2.bf16.msra.mxu0 %v2124_v42  ;;  %1381 = vmatpush2.bf16.msra.mxu1 %v2125_v43  ;;  %v2182_v42 = vld [vmem:[%s2900_s18 + $0x8c] ss:$16 sps:$4 sm:$0xff]  }
  0xf2   : > { %1341 = vmatprep.subr.bf16.mxu0 %v2126_v44  ;;  %1382 = vmatprep.subr.bf16.mxu1 %v2128_v45  ;;  %v2185_v43 = vld [vmem:[%s2900_s18 + $0x28c] ss:$16 sps:$4 sm:$0xff]   ;;  %v2180_v44 = vld [vmem:[%s2900_s18 + $0x88] ss:$16 sps:$4 sm:$0xff]  }
  0xf3   : > { %v2183_v45 = vld [vmem:[%s2900_s18 + $0x288] ss:$16 sps:$4 sm:$0xff]  }
  0xf5   : > { %1342 = vmatpush2.bf16.msra.mxu0 %v2130_v46  ;;  %1383 = vmatpush2.bf16.msra.mxu1 %v2131_v47  ;;  %v2188_v46 = vld [vmem:[%s2900_s18 + $0x6c] ss:$16 sps:$4 sm:$0xff]  }
  0xf6   : > { %1343 = vmatprep.subr.bf16.mxu0 %v2132_v48  ;;  %1384 = vmatprep.subr.bf16.mxu1 %v2134_v49  ;;  %v2191_v47 = vld [vmem:[%s2900_s18 + $0x26c] ss:$16 sps:$4 sm:$0xff]   ;;  %v2186_v48 = vld [vmem:[%s2900_s18 + $0x68] ss:$16 sps:$4 sm:$0xff]  }
  0xf7   : > { %v2189_v49 = vld [vmem:[%s2900_s18 + $0x268] ss:$16 sps:$4 sm:$0xff]  }
  0xf9   : > { %1344 = vmatpush2.bf16.msra.mxu0 %v2136_v50  ;;  %1385 = vmatpush2.bf16.msra.mxu1 %v2137_v51  ;;  %v2194_v50 = vld [vmem:[%s2900_s18 + $0x4c] ss:$16 sps:$4 sm:$0xff]  }
  0xfa   : > { %1345 = vmatprep.subr.bf16.mxu0 %v2138_v52  ;;  %1386 = vmatprep.subr.bf16.mxu1 %v2140_v53  ;;  %v2197_v51 = vld [vmem:[%s2900_s18 + $0x24c] ss:$16 sps:$4 sm:$0xff]   ;;  %v2192_v52 = vld [vmem:[%s2900_s18 + $0x48] ss:$16 sps:$4 sm:$0xff]  }
  0xfb   : > { %v2195_v53 = vld [vmem:[%s2900_s18 + $0x248] ss:$16 sps:$4 sm:$0xff]  }
  0xfd   : > { %1346 = vmatpush2.bf16.msra.mxu0 %v2142_v54  ;;  %1387 = vmatpush2.bf16.msra.mxu1 %v2143_v55  ;;  %v2200_v54 = vld [vmem:[%s2900_s18 + $0x2c] ss:$16 sps:$4 sm:$0xff]  }
  0xfe   : > { %1347 = vmatprep.subr.bf16.mxu0 %v2144_v56  ;;  %1388 = vmatprep.subr.bf16.mxu1 %v2146_v57  ;;  %v2203_v55 = vld [vmem:[%s2900_s18 + $0x22c] ss:$16 sps:$4 sm:$0xff]   ;;  %v2198_v56 = vld [vmem:[%s2900_s18 + $0x28] ss:$16 sps:$4 sm:$0xff]  }
  0xff   : > { %v2201_v57 = vld [vmem:[%s2900_s18 + $0x228] ss:$16 sps:$4 sm:$0xff]  }
 0x101   : > { %1348 = vmatpush2.bf16.msra.mxu0 %v2148_v58  ;;  %1389 = vmatpush2.bf16.msra.mxu1 %v2149_v59  ;;  %v2206_v58 = vld [vmem:[%s2900_s18 + $0xc] ss:$16 sps:$4 sm:$0xff]  }
 0x102   : > { %1349 = vmatprep.subr.bf16.mxu0 %v2150_v60  ;;  %1390 = vmatprep.subr.bf16.mxu1 %v2152_v61  ;;  %v2209_v59 = vld [vmem:[%s2900_s18 + $0x20c] ss:$16 sps:$4 sm:$0xff]   ;;  %v2204_v60 = vld [vmem:[%s2900_s18 + $0x8] ss:$16 sps:$4 sm:$0xff]  }
 0x103   : > { %v2207_v61 = vld [vmem:[%s2900_s18 + $0x208] ss:$16 sps:$4 sm:$0xff]  }
 0x105   : > { %1350 = vmatpush2.bf16.msra.mxu0 %v2154_v62  ;;  %1391 = vmatpush2.bf16.msra.mxu1 %v2155_v63  ;;  %v2212_v62 = vld [vmem:[%s2900_s18 + $0x1ec] ss:$16 sps:$4 sm:$0xff]  }
 0x106   : > { %1351 = vmatprep.subr.bf16.mxu0 %v2156_v0  ;;  %1392 = vmatprep.subr.bf16.mxu1 %v2158_v1  ;;  %v2215_v63 = vld [vmem:[%s2900_s18 + $0x3ec] ss:$16 sps:$4 sm:$0xff]   ;;  %v2210_v0 = vld [vmem:[%s2900_s18 + $0x1e8] ss:$16 sps:$4 sm:$0xff]  }
 0x107   : > { %v2213_v1 = vld [vmem:[%s2900_s18 + $0x3e8] ss:$16 sps:$4 sm:$0xff]  }
 0x109   : > { %1352 = vmatpush2.bf16.msra.mxu0 %v2160_v2  ;;  %1393 = vmatpush2.bf16.msra.mxu1 %v2161_v3  ;;  %v2218_v2 = vld [vmem:[%s2900_s18 + $0x1cc] ss:$16 sps:$4 sm:$0xff]  }
 0x10a   : > { %1403 = vmatprep.subr.bf16.mxu0 %v2164_v4  ;;  %1444 = vmatprep.subr.bf16.mxu1 %v2167_v5  ;;  %v2221_v3 = vld [vmem:[%s2900_s18 + $0x3cc] ss:$16 sps:$4 sm:$0xff]   ;;  %v2216_v4 = vld [vmem:[%s2900_s18 + $0x1c8] ss:$16 sps:$4 sm:$0xff]  }
 0x10b   : > { %v2219_v5 = vld [vmem:[%s2900_s18 + $0x3c8] ss:$16 sps:$4 sm:$0xff]  }
 0x147   : > { %v2998_v6 = vpop.permute.xlu0 %520 }
 0x148   : > { %v523_v15 = vmul.f32 %v2998_v6, %v514_v7  ;;  %v525_v16 = vmul.f32 %v2998_v6, %v516_v8  ;;  %v524_v18 = vmul.f32 %v2998_v6, %v515_v10  ;;  %v526_v19 = vmul.f32 %v2998_v6, %v517_v11  ;;  %v2224_v7 = vld [vmem:[%s2900_s18 + $0x1ac] ss:$16 sps:$4 sm:$0xff]   ;;  %v2225_v10 = vld [vmem:[%s2900_s18 + $0x3a8] ss:$16 sps:$4 sm:$0xff]  }
 0x149   : > { %v2227_v8 = vld [vmem:[%s2900_s18 + $0x3ac] ss:$16 sps:$4 sm:$0xff]  }
 0x14a   : > { %v2230_v11 = vld [vmem:[%s2900_s18 + $0x18c] ss:$16 sps:$4 sm:$0xff]  }
 0x14b   : > { %v535_v17 = vpop.permute.xlu0 %534 }
 0x14c   : > { %v537_v20 = vmul.f32 %v535_v17, %v528_v9  ;;  %v538_v21 = vmul.f32 %v535_v17, %v529_v12  ;;  %v539_v22 = vmul.f32 %v535_v17, %v530_v13  ;;  %v540_v23 = vmul.f32 %v535_v17, %v531_v14  ;;  %v2222_v9 = vld [vmem:[%s2900_s18 + $0x1a8] ss:$16 sps:$4 sm:$0xff]   ;;  %v2233_v12 = vld [vmem:[%s2900_s18 + $0x38c] ss:$16 sps:$4 sm:$0xff]  }
 0x14d   : > { %v2228_v13 = vld [vmem:[%s2900_s18 + $0x188] ss:$16 sps:$4 sm:$0xff]  }
 0x14e   : > { %v542_v24 = vadd.f32 %v538_v21, %v524_v18  ;;  %v544_v25 = vadd.f32 %v540_v23, %v526_v19  ;;  %v541_v26 = vadd.f32 %v537_v20, %v523_v15  ;;  %v543_v27 = vadd.f32 %v539_v22, %v525_v16  ;;  %v2231_v14 = vld [vmem:[%s2900_s18 + $0x388] ss:$16 sps:$4 sm:$0xff]   ;;  %v2236_v15 = vld [vmem:[%s2900_s18 + $0x16c] ss:$16 sps:$4 sm:$0xff]  }
 0x14f   : > { %v2239_v16 = vld [vmem:[%s2900_s18 + $0x36c] ss:$16 sps:$4 sm:$0xff]   ;;  %v2234_v17 = vld [vmem:[%s2900_s18 + $0x168] ss:$16 sps:$4 sm:$0xff]  }
 0x150   : > { %v550_v28 = vpack.c.bf16 %v542_v24, %v542_v24  ;;  %v552_v29 = vpack.c.bf16 %v544_v25, %v544_v25  ;;  %v3014_v32 = vpack.c.bf16 %v541_v26, %v541_v26  ;;  %v3016_v33 = vpack.c.bf16 %v543_v27, %v543_v27  ;;  %v2237_v18 = vld [vmem:[%s2900_s18 + $0x368] ss:$16 sps:$4 sm:$0xff]   ;;  %v2242_v19 = vld [vmem:[%s2900_s18 + $0x14c] ss:$16 sps:$4 sm:$0xff]  }
 0x151   : > { %v2245_v20 = vld [vmem:[%s2900_s18 + $0x34c] ss:$16 sps:$4 sm:$0xff]   ;;  %v2240_v21 = vld [vmem:[%s2900_s18 + $0x148] ss:$16 sps:$4 sm:$0xff]  }
 0x152   : > { %1353 = vmatprep.mubr.bf16.mxu0 %v550_v28  ;;  %1394 = vmatprep.mubr.bf16.mxu1 %v552_v29  ;;  %v2243_v22 = vld [vmem:[%s2900_s18 + $0x348] ss:$16 sps:$4 sm:$0xff]   ;;  %v2248_v23 = vld [vmem:[%s2900_s18 + $0x12c] ss:$16 sps:$4 sm:$0xff]  }
 0x153   : > { %1354 = vmatmul.mubr.bf16.vlgmr.msra.gmra.mxu0 %v3014_v32  ;;  %1395 = vmatmul.mubr.bf16.vlgmr.msra.gmra.mxu1 %v3016_v33  ;;  %v2251_v24 = vld [vmem:[%s2900_s18 + $0x32c] ss:$16 sps:$4 sm:$0xff]   ;;  %v2246_v25 = vld [vmem:[%s2900_s18 + $0x128] ss:$16 sps:$4 sm:$0xff]  }
 0x154   : > { %1404 = vmatpush1.bf16.msra.mxu0 %v2162_v30  ;;  %1445 = vmatpush1.bf16.msra.mxu1 %v2165_v31  ;;  %v2249_v26 = vld [vmem:[%s2900_s18 + $0x328] ss:$16 sps:$4 sm:$0xff]   ;;  %v2254_v27 = vld [vmem:[%s2900_s18 + $0x10c] ss:$16 sps:$4 sm:$0xff]  }
 0x155   : > { %1435 = vmatprep.mubr.bf16.mxu0 %v550_v28  ;;  %1476 = vmatprep.mubr.bf16.mxu1 %v552_v29  ;;  %v2257_v28 = vld [vmem:[%s2900_s18 + $0x30c] ss:$16 sps:$4 sm:$0xff]   ;;  %v2252_v29 = vld [vmem:[%s2900_s18 + $0x108] ss:$16 sps:$4 sm:$0xff]  }
 0x156   : > { %1405 = vmatprep.subr.bf16.mxu0 %v2170_v34  ;;  %1446 = vmatprep.subr.bf16.mxu1 %v2173_v35  ;;  %v2255_v30 = vld [vmem:[%s2900_s18 + $0x308] ss:$16 sps:$4 sm:$0xff]   ;;  %v545_v34 = vld [vmem:[#allocation2 + $0x10] sm:$0xff] }
 0x158   : > { %1406 = vmatpush1.bf16.msra.mxu0 %v2168_v36  ;;  %1447 = vmatpush1.bf16.msra.mxu1 %v2171_v37 }
 0x159   : > { %1407 = vmatprep.subr.bf16.mxu0 %v2176_v38  ;;  %1448 = vmatprep.subr.bf16.mxu1 %v2179_v39  ;;  %v546_v38 = vld [vmem:[#allocation2] sm:$0xff] }
 0x15c   : > { %1408 = vmatpush1.bf16.msra.mxu0 %v2174_v40  ;;  %1449 = vmatpush1.bf16.msra.mxu1 %v2177_v41 }
 0x15d   : > { %1409 = vmatprep.subr.bf16.mxu0 %v2182_v42  ;;  %1450 = vmatprep.subr.bf16.mxu1 %v2185_v43 }
 0x160   : > { %1410 = vmatpush1.bf16.msra.mxu0 %v2180_v44  ;;  %1451 = vmatpush1.bf16.msra.mxu1 %v2183_v45 }
 0x161   : > { %1411 = vmatprep.subr.bf16.mxu0 %v2188_v46  ;;  %1452 = vmatprep.subr.bf16.mxu1 %v2191_v47 }
 0x164   : > { %1412 = vmatpush1.bf16.msra.mxu0 %v2186_v48  ;;  %1453 = vmatpush1.bf16.msra.mxu1 %v2189_v49 }
 0x165   : > { %1413 = vmatprep.subr.bf16.mxu0 %v2194_v50  ;;  %1454 = vmatprep.subr.bf16.mxu1 %v2197_v51  ;;  %v548_v50 = vld [vmem:[#allocation2 + $0x8] sm:$0xff] }
 0x168   : > { %1414 = vmatpush1.bf16.msra.mxu0 %v2192_v52  ;;  %1455 = vmatpush1.bf16.msra.mxu1 %v2195_v53 }
 0x169   : > { %1415 = vmatprep.subr.bf16.mxu0 %v2200_v54  ;;  %1456 = vmatprep.subr.bf16.mxu1 %v2203_v55 }
 0x16c   : > { %1416 = vmatpush1.bf16.msra.mxu0 %v2198_v56  ;;  %1457 = vmatpush1.bf16.msra.mxu1 %v2201_v57 }
 0x16d   : > { %1417 = vmatprep.subr.bf16.mxu0 %v2206_v58  ;;  %1458 = vmatprep.subr.bf16.mxu1 %v2209_v59 }
 0x170   : > { %1418 = vmatpush1.bf16.msra.mxu0 %v2204_v60  ;;  %1459 = vmatpush1.bf16.msra.mxu1 %v2207_v61 }
 0x171   : > { %1419 = vmatprep.subr.bf16.mxu0 %v2212_v62  ;;  %1460 = vmatprep.subr.bf16.mxu1 %v2215_v63 }
 0x174   : > { %1420 = vmatpush2.bf16.msra.mxu0 %v2210_v0  ;;  %1461 = vmatpush2.bf16.msra.mxu1 %v2213_v1 }
 0x175   : > { %1421 = vmatprep.subr.bf16.mxu0 %v2218_v2  ;;  %1462 = vmatprep.subr.bf16.mxu1 %v2221_v3 }
 0x178   : > { %1422 = vmatpush2.bf16.msra.mxu0 %v2216_v4  ;;  %1463 = vmatpush2.bf16.msra.mxu1 %v2219_v5 }
 0x179   : > { %1423 = vmatprep.subr.bf16.mxu0 %v2224_v7  ;;  %1464 = vmatprep.subr.bf16.mxu1 %v2227_v8 }
 0x17c   : > { %1424 = vmatpush2.bf16.msra.mxu0 %v2222_v9  ;;  %1465 = vmatpush2.bf16.msra.mxu1 %v2225_v10 }
 0x17d   : > { %1425 = vmatprep.subr.bf16.mxu0 %v2230_v11  ;;  %1466 = vmatprep.subr.bf16.mxu1 %v2233_v12 }
 0x180   : > { %1426 = vmatpush2.bf16.msra.mxu0 %v2228_v13  ;;  %1467 = vmatpush2.bf16.msra.mxu1 %v2231_v14 }
 0x181   : > { %1427 = vmatprep.subr.bf16.mxu0 %v2236_v15  ;;  %1468 = vmatprep.subr.bf16.mxu1 %v2239_v16 }
 0x184   : > { %1428 = vmatpush2.bf16.msra.mxu0 %v2234_v17  ;;  %1469 = vmatpush2.bf16.msra.mxu1 %v2237_v18 }
 0x185   : > { %1429 = vmatprep.subr.bf16.mxu0 %v2242_v19  ;;  %1470 = vmatprep.subr.bf16.mxu1 %v2245_v20 }
 0x188   : > { %1430 = vmatpush2.bf16.msra.mxu0 %v2240_v21  ;;  %1471 = vmatpush2.bf16.msra.mxu1 %v2243_v22 }
 0x189   : > { %1431 = vmatprep.subr.bf16.mxu0 %v2248_v23  ;;  %1472 = vmatprep.subr.bf16.mxu1 %v2251_v24 }
 0x18c   : > { %1432 = vmatpush2.bf16.msra.mxu0 %v2246_v25  ;;  %1473 = vmatpush2.bf16.msra.mxu1 %v2249_v26 }
 0x18d   : > { %1433 = vmatprep.subr.bf16.mxu0 %v2254_v27  ;;  %1474 = vmatprep.subr.bf16.mxu1 %v2257_v28 }
 0x190   : > { %1434 = vmatpush2.bf16.msra.mxu0 %v2252_v29  ;;  %1475 = vmatpush2.bf16.msra.mxu1 %v2255_v30 }
 0x193   : > { %1436 = vmatmul.mubr.bf16.vlgmr.msra.gmra.mxu0 %v3014_v32  ;;  %1477 = vmatmul.mubr.bf16.vlgmr.msra.gmra.mxu1 %v3016_v33  ;;  %v547_v32 = vld [vmem:[#allocation2 + $0x18] sm:$0xff] }
 0x213   : > { %v1355_v31 = vpop.f32.mrf.mxu0  ;;  %v1396_v35 = vpop.f32.mrf.mxu1 }
 0x214   : > { %v1397_v36 = vadd.f32 %v1396_v35, %v1355_v31 }
 0x215   : > { %v1357_v37 = vpop.f32.mrf.mxu0  ;;  %v1398_v39 = vpop.f32.mrf.mxu1 }
 0x216   : > { %v1485_v40 = vadd.f32 %v1397_v36, %v545_v34  ;;  %v1399_v41 = vadd.f32 %v1398_v39, %v1357_v37 }
 0x217   : > { %v1359_v42 = vpop.f32.mrf.mxu0  ;;  %v1400_v43 = vpop.f32.mrf.mxu1 }
 0x218   : > { %1489 = vst [vmem:[#allocation2 + $0x10] sm:$0xff] %v1485_v40  ;;  %v1486_v44 = vadd.f32 %v1399_v41, %v546_v38 }
 0x219   : > { %v1360_v45 = vpop.f32.mrf.mxu0  ;;  %v1401_v46 = vpop.f32.mrf.mxu1 }
 0x21a   : > { %1490 = vst [vmem:[#allocation2] sm:$0xff] %v1486_v44 }
 0x253   : > { %v1437_v47 = vpop.f32.mrf.mxu0  ;;  %v1478_v48 = vpop.f32.mrf.mxu1 }
 0x254   : > { %v1479_v33 = vadd.f32 %v1478_v48, %v1437_v47 }
 0x255   : > { %v1439_v49 = vpop.f32.mrf.mxu0  ;;  %v1480_v51 = vpop.f32.mrf.mxu1 }
 0x256   : > { %v1487_v52 = vadd.f32 %v1479_v33, %v547_v32  ;;  %v1481_v53 = vadd.f32 %v1480_v51, %v1439_v49  ;;  %1496 = sbr.rel (%p1907_p12) target bundleno = 764 (0x2fc), region = 80 }
 0x257   : > { %v1441_v54 = vpop.f32.mrf.mxu0  ;;  %v1482_v55 = vpop.f32.mrf.mxu1 }
 0x258   : > { %1491 = vst [vmem:[#allocation2 + $0x18] sm:$0xff] %v1487_v52  ;;  %v1488_v56 = vadd.f32 %v1481_v53, %v548_v50 }
 0x259   : > { %v1442_v57 = vpop.f32.mrf.mxu0  ;;  %v1483_v58 = vpop.f32.mrf.mxu1 }
 0x25a   : > { %1492 = vst [vmem:[#allocation2 + $0x8] sm:$0xff] %v1488_v56 }
 0x25b   : > { %v1503_v59 = vlaneseq  ;;  %v1501_v60 = vld [vmem:[%s2907_s16] sm:$0xf]  ;;  %v1531_v62 = vld [vmem:[%s2913_s3] sm:$0xff]  ;;  %v1532_v63 = vld [vmem:[%s2913_s3 + $0x8] sm:$0xff]  ;;  %vm1556_vm0 = vcmask 7168  }
 0x25c   : > { %v1533_v0 = vld [vmem:[%s2913_s3 + $0x10] sm:$0xff]  ;;  %v1497_v1 = vld [vmem:[#allocation2 + $0x10] sm:$0xff]  ;;  %v1534_v2 = vld [vmem:[%s2913_s3 + $0x18] sm:$0xff] }
 0x25d   : > { %v1504_v61 = vshrl.u32 %v1503_v59, 7  ;;  %v1535_v3 = vld [vmem:[%s2915_s1] sm:$0xff]  ;;  %v1536_v4 = vld [vmem:[%s2915_s1 + $0x8] sm:$0xff]  ;;  %v1537_v10 = vld [vmem:[%s2915_s1 + $0x10] sm:$0xff] }
 0x25e   : > { %v1538_v11 = vld [vmem:[%s2915_s1 + $0x18] sm:$0xff]  ;;  %v1539_v19 = vsub.f32 %v1531_v62, %v1535_v3  ;;  %v1540_v20 = vsub.f32 %v1532_v63, %v1536_v4  ;;  %v1541_v21 = vsub.f32 %v1533_v0, %v1537_v10 }
 0x25f   : > { %v1505_v5 = vsub.s32 0, %v1504_v61  ;;  %v1509_v7 = vsub.s32 1, %v1504_v61  ;;  %v1513_v8 = vsub.s32 2, %v1504_v61  ;;  %v1517_v9 = vsub.s32 3, %v1504_v61  ;;  %v1498_v12 = vld [vmem:[#allocation2] sm:$0xff]  ;;  %v1499_v13 = vld [vmem:[#allocation2 + $0x18] sm:$0xff] }
 0x260   : > { %v1542_v22 = vsub.f32 %v1534_v2, %v1538_v11 }
 0x261   : > { %v1500_v14 = vld [vmem:[#allocation2 + $0x8] sm:$0xff]  ;;  %v1506_v15 = vrot.slane %v1501_v60, %v1505_v5  ;;  %v1510_v16 = vrot.slane %v1501_v60, %v1509_v7  ;;  %v1514_v17 = vrot.slane %v1501_v60, %v1513_v8  ;;  %v1518_v18 = vrot.slane %v1501_v60, %v1517_v9 }
 0x263   : > { %v1523_v23 = vadd.f32 %v1506_v15, %v1497_v1  ;;  %v1524_v24 = vadd.f32 %v1510_v16, %v1498_v12  ;;  %v1525_v25 = vadd.f32 %v1514_v17, %v1499_v13  ;;  %v1526_v26 = vadd.f32 %v1518_v18, %v1500_v14 }
 0x265   : > { %v1527_v27 = vadd.f32 %v1523_v23, %v2998_v6  ;;  %v1528_v28 = vadd.f32 %v1524_v24, %v2998_v6  ;;  %v1529_v29 = vadd.f32 %v1525_v25, %v2998_v6  ;;  %v1530_v30 = vadd.f32 %v1526_v26, %v2998_v6 }
 0x267   : > { %v1543_v31 = vsub.f32 %v1527_v27, %v1539_v19  ;;  %v1544_v34 = vsub.f32 %v1528_v28, %v1540_v20  ;;  %v1545_v35 = vsub.f32 %v1529_v29, %v1541_v21  ;;  %v1546_v36 = vsub.f32 %v1530_v30, %v1542_v22 }
 0x269   : > { %v1547_v37 = vmul.f32 %v1543_v31, %v1543_v31  ;;  %v1548_v38 = vmul.f32 %v1544_v34, %v1544_v34  ;;  %v1549_v39 = vmul.f32 %v1545_v35, %v1545_v35  ;;  %v1550_v40 = vmul.f32 %v1546_v36, %v1546_v36 }
 0x26b   : > { %v1551_v41 = vadd.f32 %v1548_v38, %v1547_v37 }
 0x26d   : > { %v1552_v42 = vadd.f32 %v1551_v41, %v1549_v39 }
 0x26f   : > { %v1553_v43 = vadd.f32 %v1552_v42, %v1550_v40 }
 0x271   : > { %1554 = vadd.xlane.f32.xlu0 %v1553_v43 }
 0x2fa   : > { %v1555_v44 = vpop.xlane.xlu0 %1554 }
 0x2fb   : > { %1557 = vst.msk [vmem:[%s2926_s24] sm:$0xff] %vm1556_vm0, %v1555_v44 }
 0x2fc PF: > { %s29_s14 = sadd.s32 1, %s2556_s14   ;;  %s3229_s20 = sld [smem:[#allocation18_spill]] }
 0x2fd   : > { %p3098_p7 = scmp.ge.s32.totalorder %s29_s14, 6   ;;  %s3230_s18 = sld [smem:[#allocation30_spill]] }
 0x2fe   : > { %s3231_s27 = sld [smem:[#allocation19_spill]]  ;;  %s3239_s24 = smov %s2508_s25 }
 0x2ff   : > { %s3232_s23 = sld [smem:[#allocation28_spill]]  ;;  %s3242_s28 = smov %s2524_s29 }
 0x300   : > { %s3233_s30 = sld [smem:[#allocation20_spill]]  ;;  %s3244_s8 = smov %s2536_s9 }
 0x301   : > { %s3234_s17 = sld [smem:[#allocation26_spill]]  ;;  %s3246_s11 = smov %s2552_s13 }
 0x302   : > { %s3235_s10 = sld [smem:[#allocation23_spill]]  ;;  %s3240_s25 = smov %s3229_s20 }
 0x303   : > { %s3236_s12 = sld [smem:[#allocation24_spill]]  ;;  %s3241_s26 = smov %s3230_s18 }
 0x304   : > { %s3237_s7 = sld [smem:[#allocation25_spill]] }
 0x305   : > { %s3243_s29 = smov %s3232_s23 }
 0x306   :  { %28 = sbr.rel (!%p3098_p7) target bundleno = 20 (0x14), region = 157 }
 0x307   : > { %s3245_s9 = smov %s3234_s17 }
 0x30a   : > { %s3247_s13 = smov %s3237_s7 }
 0x30b   :  { %1577 = vsyncpa [#allocation4], 1 }
 0x30c   :  { %1579 = vsyncpa [#allocation4 + $0x1], 1 }
 0x30d   :  { %1580 = vsyncpa [#allocation6], 1 }
 0x30e   :  { %1582 = vsyncpa [#allocation6 + $0x1], 1 }
 0x30f   :  { %1583 = vsyncpa [#allocation9], 1 }
 0x310   :  { %1585 = vsyncpa [#allocation9 + $0x1], 1 }
 0x311   :  { %1586 = vsyncpa [#allocation12], 1 }
 0x312   :  { %1588 = vsyncpa [#allocation12 + $0x1], 1 }

</bundles_post_ra>
